<compile_context>
chip_gen: v7x
topology: tpu7x:2x2x1
jax: 0.10.0
libtpu: 0.0.40
codegen_flags: <defaults>
</compile_context>

<pallas_src>
import math
import jax
import jax.numpy as jnp
from jax.experimental import pallas as pl
from jax.experimental.pallas import tpu as pltpu


def _round_up(x, m):
    return ((x + m - 1) // m) * m


def _linear_kernel(w_ref, b_ref, xT_ref, o_ref):
    # w_ref: SMEM (F,) f32, b_ref: SMEM (1,) f32
    # xT_ref: VMEM (F, TB) tile of x^T, o_ref: VMEM (1, TB) tile of y^T
    F, TB = xT_ref.shape
    x = xT_ref[...]                                          # (F, TB) lane-dense load
    acc = jnp.full((1, TB), b_ref[0], dtype=jnp.float32)     # bias folded into init
    # Static F (=13): fully unrolled VPU FMAs with SMEM scalar weights. No MXU/XLU.
    for f in range(F):
        acc = acc + w_ref[f] * x[f:f + 1, :]
    o_ref[...] = acc.astype(o_ref.dtype)


def linear_regression_forward(x, weight, bias, *, block_b=4096):
    """x: (B, F) f32, weight: (1, F) f32, bias: (1,) f32 -> (B, 1) f32."""
    B, F = x.shape

    # Lane-dense tile width on the batch axis (multiple of 128), capped by block_b.
    TB = min(_round_up(block_b, 128), _round_up(B, 128))
    B_pad = _round_up(B, TB)

    # Transposed layout: batch on the lane axis. Padding columns are zeros and are
    # sliced off after the call.
    xT = x.astype(jnp.float32).T
    if B_pad != B:
        xT = jnp.pad(xT, ((0, 0), (0, B_pad - B)))

    w_flat = weight.reshape(-1).astype(jnp.float32)   # (F,) -> SMEM
    b_flat = bias.reshape(-1).astype(jnp.float32)     # (1,) -> SMEM

    yT = pl.pallas_call(
        _linear_kernel,
        out_shape=jax.ShapeDtypeStruct((1, B_pad), jnp.float32),
        grid_spec=pl.GridSpec(
            grid=(B_pad // TB,),
            in_specs=[
                pl.BlockSpec(memory_space=pltpu.MemorySpace.SMEM),   # weight (F,)
                pl.BlockSpec(memory_space=pltpu.MemorySpace.SMEM),   # bias   (1,)
                pl.BlockSpec((F, TB), lambda i: (0, i)),             # x^T tile
            ],
            out_specs=pl.BlockSpec((1, TB), lambda i: (0, i)),       # y^T tile
        ),
        compiler_params=pltpu.CompilerParams(
            dimension_semantics=("parallel",)),
    )(w_flat, b_flat, xT)

    return yT[0, :B].reshape(B, 1).astype(x.dtype)


if __name__ == "__main__":
    # Boston housing: 13 features; small batch of 8 samples.
    num_inputs = 13
    batch = 8

    key = jax.random.PRNGKey(0)
    kx, kw, kb = jax.random.split(key, 3)

    x = jax.random.normal(kx, (batch, num_inputs), dtype=jnp.float32)

    # Deterministic nn.Linear-style init: U(-1/sqrt(F), 1/sqrt(F))
    bound = 1.0 / math.sqrt(num_inputs)
    weight = jax.random.uniform(kw, (1, num_inputs), dtype=jnp.float32,
                                minval=-bound, maxval=bound)
    bias = jax.random.uniform(kb, (1,), dtype=jnp.float32,
                              minval=-bound, maxval=bound)

    y = linear_regression_forward(x, weight, bias)
    y = jax.block_until_ready(y)

    # Correctness check against plain-JAX reference of the PyTorch forward.
    y_ref = x @ weight.T + bias
    assert y.shape == (batch, 1)
    assert jnp.allclose(y, y_ref, atol=1e-5, rtol=1e-5)

    print("KERNEL_OK")
</pallas_src>

<mosaic_0001>
module attributes {stable_mosaic.version = 11 : i64} {
  func.func @_linear_kernel(%arg0: i32, %arg1: memref<13xf32, #tpu.memory_space<smem>>, %arg2: memref<1xf32, #tpu.memory_space<smem>>, %arg3: memref<13x128xf32, #tpu.memory_space<vmem>>, %arg4: memref<1x128xf32, #tpu.memory_space<vmem>>) attributes {dimension_semantics = [#tpu.dimension_semantics<parallel>], iteration_bounds = array<i64: 1>, scalar_prefetch = 0 : i64, scratch_operands = 0 : i64, tpu.core_type = #tpu.core_type<tc>, window_params = [{transform_indices = @transform_0, window_bounds = array<i64: 13>}, {transform_indices = @transform_1, window_bounds = array<i64: 1>}, {transform_indices = @transform_2, window_bounds = array<i64: 13, 128>}, {transform_indices = @transform_3, window_bounds = array<i64: 1, 128>}]} {
    %c0 = arith.constant 0 : index
    %c0_0 = arith.constant 0 : index
    %0 = vector.load %arg3[%c0, %c0_0] : memref<13x128xf32, #tpu.memory_space<vmem>>, vector<13x128xf32>
    %c0_1 = arith.constant 0 : index
    %1 = memref.load %arg2[%c0_1] : memref<1xf32, #tpu.memory_space<smem>>
    %2 = vector.broadcast %1 : f32 to vector<1x128xf32>
    %c0_2 = arith.constant 0 : index
    %3 = memref.load %arg1[%c0_2] : memref<13xf32, #tpu.memory_space<smem>>
    %4 = vector.extract_strided_slice %0 {offsets = [0, 0], sizes = [1, 128], strides = [1, 1]} : vector<13x128xf32> to vector<1x128xf32>
    %5 = vector.broadcast %3 : f32 to vector<1x128xf32>
    %6 = arith.mulf %5, %4 : vector<1x128xf32>
    %7 = arith.addf %2, %6 : vector<1x128xf32>
    %c1 = arith.constant 1 : index
    %8 = memref.load %arg1[%c1] : memref<13xf32, #tpu.memory_space<smem>>
    %9 = vector.extract_strided_slice %0 {offsets = [1, 0], sizes = [1, 128], strides = [1, 1]} : vector<13x128xf32> to vector<1x128xf32>
    %10 = vector.broadcast %8 : f32 to vector<1x128xf32>
    %11 = arith.mulf %10, %9 : vector<1x128xf32>
    %12 = arith.addf %7, %11 : vector<1x128xf32>
    %c2 = arith.constant 2 : index
    %13 = memref.load %arg1[%c2] : memref<13xf32, #tpu.memory_space<smem>>
    %14 = vector.extract_strided_slice %0 {offsets = [2, 0], sizes = [1, 128], strides = [1, 1]} : vector<13x128xf32> to vector<1x128xf32>
    %15 = vector.broadcast %13 : f32 to vector<1x128xf32>
    %16 = arith.mulf %15, %14 : vector<1x128xf32>
    %17 = arith.addf %12, %16 : vector<1x128xf32>
    %c3 = arith.constant 3 : index
    %18 = memref.load %arg1[%c3] : memref<13xf32, #tpu.memory_space<smem>>
    %19 = vector.extract_strided_slice %0 {offsets = [3, 0], sizes = [1, 128], strides = [1, 1]} : vector<13x128xf32> to vector<1x128xf32>
    %20 = vector.broadcast %18 : f32 to vector<1x128xf32>
    %21 = arith.mulf %20, %19 : vector<1x128xf32>
    %22 = arith.addf %17, %21 : vector<1x128xf32>
    %c4 = arith.constant 4 : index
    %23 = memref.load %arg1[%c4] : memref<13xf32, #tpu.memory_space<smem>>
    %24 = vector.extract_strided_slice %0 {offsets = [4, 0], sizes = [1, 128], strides = [1, 1]} : vector<13x128xf32> to vector<1x128xf32>
    %25 = vector.broadcast %23 : f32 to vector<1x128xf32>
    %26 = arith.mulf %25, %24 : vector<1x128xf32>
    %27 = arith.addf %22, %26 : vector<1x128xf32>
    %c5 = arith.constant 5 : index
    %28 = memref.load %arg1[%c5] : memref<13xf32, #tpu.memory_space<smem>>
    %29 = vector.extract_strided_slice %0 {offsets = [5, 0], sizes = [1, 128], strides = [1, 1]} : vector<13x128xf32> to vector<1x128xf32>
    %30 = vector.broadcast %28 : f32 to vector<1x128xf32>
    %31 = arith.mulf %30, %29 : vector<1x128xf32>
    %32 = arith.addf %27, %31 : vector<1x128xf32>
    %c6 = arith.constant 6 : index
    %33 = memref.load %arg1[%c6] : memref<13xf32, #tpu.memory_space<smem>>
    %34 = vector.extract_strided_slice %0 {offsets = [6, 0], sizes = [1, 128], strides = [1, 1]} : vector<13x128xf32> to vector<1x128xf32>
    %35 = vector.broadcast %33 : f32 to vector<1x128xf32>
    %36 = arith.mulf %35, %34 : vector<1x128xf32>
    %37 = arith.addf %32, %36 : vector<1x128xf32>
    %c7 = arith.constant 7 : index
    %38 = memref.load %arg1[%c7] : memref<13xf32, #tpu.memory_space<smem>>
    %39 = vector.extract_strided_slice %0 {offsets = [7, 0], sizes = [1, 128], strides = [1, 1]} : vector<13x128xf32> to vector<1x128xf32>
    %40 = vector.broadcast %38 : f32 to vector<1x128xf32>
    %41 = arith.mulf %40, %39 : vector<1x128xf32>
    %42 = arith.addf %37, %41 : vector<1x128xf32>
    %c8 = arith.constant 8 : index
    %43 = memref.load %arg1[%c8] : memref<13xf32, #tpu.memory_space<smem>>
    %44 = vector.extract_strided_slice %0 {offsets = [8, 0], sizes = [1, 128], strides = [1, 1]} : vector<13x128xf32> to vector<1x128xf32>
    %45 = vector.broadcast %43 : f32 to vector<1x128xf32>
    %46 = arith.mulf %45, %44 : vector<1x128xf32>
    %47 = arith.addf %42, %46 : vector<1x128xf32>
    %c9 = arith.constant 9 : index
    %48 = memref.load %arg1[%c9] : memref<13xf32, #tpu.memory_space<smem>>
    %49 = vector.extract_strided_slice %0 {offsets = [9, 0], sizes = [1, 128], strides = [1, 1]} : vector<13x128xf32> to vector<1x128xf32>
    %50 = vector.broadcast %48 : f32 to vector<1x128xf32>
    %51 = arith.mulf %50, %49 : vector<1x128xf32>
    %52 = arith.addf %47, %51 : vector<1x128xf32>
    %c10 = arith.constant 10 : index
    %53 = memref.load %arg1[%c10] : memref<13xf32, #tpu.memory_space<smem>>
    %54 = vector.extract_strided_slice %0 {offsets = [10, 0], sizes = [1, 128], strides = [1, 1]} : vector<13x128xf32> to vector<1x128xf32>
    %55 = vector.broadcast %53 : f32 to vector<1x128xf32>
    %56 = arith.mulf %55, %54 : vector<1x128xf32>
    %57 = arith.addf %52, %56 : vector<1x128xf32>
    %c11 = arith.constant 11 : index
    %58 = memref.load %arg1[%c11] : memref<13xf32, #tpu.memory_space<smem>>
    %59 = vector.extract_strided_slice %0 {offsets = [11, 0], sizes = [1, 128], strides = [1, 1]} : vector<13x128xf32> to vector<1x128xf32>
    %60 = vector.broadcast %58 : f32 to vector<1x128xf32>
    %61 = arith.mulf %60, %59 : vector<1x128xf32>
    %62 = arith.addf %57, %61 : vector<1x128xf32>
    %c12 = arith.constant 12 : index
    %63 = memref.load %arg1[%c12] : memref<13xf32, #tpu.memory_space<smem>>
    %64 = vector.extract_strided_slice %0 {offsets = [12, 0], sizes = [1, 128], strides = [1, 1]} : vector<13x128xf32> to vector<1x128xf32>
    %65 = vector.broadcast %63 : f32 to vector<1x128xf32>
    %66 = arith.mulf %65, %64 : vector<1x128xf32>
    %67 = arith.addf %62, %66 : vector<1x128xf32>
    %c0_3 = arith.constant 0 : index
    %c0_4 = arith.constant 0 : index
    %68 = vector.load %arg4[%c0_3, %c0_4] : memref<1x128xf32, #tpu.memory_space<vmem>>, vector<1x128xf32>
    tpu.vector_store %arg4[%c0_3, %c0_4], %67 {strides = array<i32>} : memref<1x128xf32, #tpu.memory_space<vmem>>, vector<1x128xf32>,
    return
  }
  func.func @transform_0(%arg0: i32) -> i32 {
    %c0_i32 = arith.constant 0 : i32
    %c0_i32_0 = arith.constant 0 : i32
    return %c0_i32 : i32
  }
  func.func @transform_1(%arg0: i32) -> i32 {
    %c0_i32 = arith.constant 0 : i32
    %c0_i32_0 = arith.constant 0 : i32
    return %c0_i32 : i32
  }
  func.func @transform_2(%arg0: i32) -> (i32, i32) {
    %c0_i32 = arith.constant 0 : i32
    %c0_i32_0 = arith.constant 0 : i32
    return %c0_i32, %arg0 : i32, i32
  }
  func.func @transform_3(%arg0: i32) -> (i32, i32) {
    %c0_i32 = arith.constant 0 : i32
    %c0_i32_0 = arith.constant 0 : i32
    return %c0_i32, %arg0 : i32, i32
  }
}

</mosaic_0001>

<bundles_post_ra>
// kernel: tpu_custom_call.1
= control target key start
LH: loop header
LB: loop body
LE: loop exit
PB: predicated region body
PF: predicated region fallthrough
CT: control target
= control target key end

     0   :  { %9 = vsyncpa [#allocation6], 0  ;;  %s286_s0 = inlined_call_operand.vmem [shape: f32[13], index: 0, kind: input, shape index: {}]   ;;  %s287_s1 = inlined_call_operand.<no memory space> [shape: f32[1], index: 1, kind: input, shape index: {}]   ;;  %s288_s2 = inlined_call_operand.hbm [shape: f32[13,128], index: 2, kind: input, shape index: {}]   ;;  %s289_s3 = inlined_call_operand.hbm [shape: f32[1,128], index: 3, kind: output, shape index: {}]  }
   0x1   :  { %10 = vsyncpa [#allocation4], 0 }
   0x2   :  { %11 = vsyncpa [#allocation5], 0  ;;  %s18_s14 = sshll.u32 %s286_s0, 4  ;;  %s19_s14 = int_to_ptr.vmem [resolvable:$true] %s18_s14 }
   0x3   :  { %s166_s15 = scalar_lea.vmem %s19_s14, 16  ;;  %p171_p1 = scmp.lt.s32.totalorder %s19_s14, %s19_s14 }
   0x4   :  { %p167_p0 = scmp.ne.s32.totalorder %s19_s14, %s166_s15  ;;  %p172_p2 = scmp.lt.s32.totalorder %s166_s15, %s166_s15 }
   0x6   :  { %p173_p3 = por %p172_p2, %p171_p1 }
   0x8   :  { %p174_p4 = pnand %p173_p3, %p167_p0 }
   0xa   :  { %177 = shalt.err (!%p174_p4)
}
   0xb   :  { %s228_s16 = smov [#allocation3]   ;;  %s229_s17 = smov [#allocation7]  }
   0xc   :  { %21 = dma.vmem_to_smem %s19_s14, 16, %s228_s16, [#allocation6]  }
   0xd   :  { %s29_s18 = sshll.u32 %s229_s17, 4  ;;  %s178_s21 = scalar_lea.hbm %s288_s2, 256  ;;  %s30_s18 = int_to_ptr.vmem [resolvable:$true] %s29_s18 }
   0xe   :  { %p179_p5 = scmp.ne.s32.totalorder %s288_s2, %s178_s21  ;;  %p182_p6 = scmp.lt.u32.totalorder %s178_s21, %s288_s2 }
  0x10   :  { %p184_p7 = pnand %p182_p6, %p179_p5 }
  0x12   :  { %187 = shalt.err (!%p184_p7)
}
  0x13   :  { %s188_s25 = scalar_lea.vmem %s30_s18, 256  ;;  %p193_p9 = scmp.lt.s32.totalorder %s30_s18, %s30_s18 }
  0x14   :  { %p189_p8 = scmp.ne.s32.totalorder %s30_s18, %s188_s25  ;;  %p194_p10 = scmp.lt.s32.totalorder %s188_s25, %s188_s25 }
  0x16   :  { %p195_p11 = por %p194_p10, %p193_p9 }
  0x18   :  { %p196_p12 = pnand %p195_p11, %p189_p8 }
  0x1a   :  { %199 = shalt.err (!%p196_p12)
}
  0x1b   :  { %s230_s26 = smov 128   ;;  %s231_s27 = smov 8  }
  0x1c   :  { %35 = dma.hbm_to_vmem [thread:$0]  %s288_s2, 256, %s30_s18, [#allocation4], %s230_s26, %s230_s26, %s231_s27  }
  0x1d   :  { %222 = dma.done.wait [#allocation6], 16  }
  0x1e   :  { %223 = vsyncadd [#allocation6], 4294967280 }
  0x1f   :  { %224 = dma.done.wait [#allocation4], 256  }
  0x20   :  { %225 = vsyncadd [#allocation4], 4294967040 }
  0x21   :  { %42 = sfence }
  0x22   :  { %s47_s30 = sld [smem:[#allocation3]]  ;;  %s149_s4 = sld [smem:[#allocation3 + $0x1]]  ;;  %v43_v0 = vld [vmem:[#allocation7] sm:$0xff]  ;;  %v46_v1 = vstv %s287_s1  ;;  %v44_v27 = vld [vmem:[#allocation7 + $0x8] sm:$0x1f] }
  0x23   :  { %s150_s5 = sld [smem:[#allocation3 + $0x2]]  ;;  %s151_s6 = sld [smem:[#allocation3 + $0x3]] }
  0x24   :  { %s152_s7 = sld [smem:[#allocation3 + $0x4]]  ;;  %s153_s8 = sld [smem:[#allocation3 + $0x5]] }
  0x25   :  { %s154_s9 = sld [smem:[#allocation3 + $0x6]]  ;;  %s268_s10 = sld [smem:[#allocation3 + $0x7]] }
  0x26   :  { %s157_s2 = sld [smem:[#allocation3 + $0x9]]  ;;  %s156_s13 = sld [smem:[#allocation3 + $0x8]] }
  0x27   :  { %s158_s14 = sld [smem:[#allocation3 + $0xa]]  ;;  %s159_s1 = sld [smem:[#allocation3 + $0xb]] }
  0x28   :  { %v48_v2 = vstv %s47_s30  ;;  %v52_v4 = vstv %s149_s4  ;;  %s160_s15 = sld [smem:[#allocation3 + $0xc]]  ;;  %s232_s16 = smov [#allocation8]  }
  0x29   :  { %v49_v3 = vmul.f32 %v48_v2, %v43_v0  ;;  %v59_v5 = vstv %s150_s5  ;;  %v53_v6 = vmul.f32 %v52_v4, %v43_v0  ;;  %v66_v8 = vstv %s151_s6  ;;  %s139_s17 = sshll.u32 %s232_s16, 4  ;;  %s140_s17 = int_to_ptr.vmem [resolvable:$true] %s139_s17 }
  0x2a   :  { %v60_v7 = vmul.f32 %v59_v5, %v43_v0  ;;  %v73_v9 = vstv %s152_s7  ;;  %v67_v11 = vmul.f32 %v66_v8, %v43_v0  ;;  %v80_v12 = vstv %s153_s8  ;;  %s200_s18 = scalar_lea.vmem %s140_s17, 16  ;;  %s204_s19 = scalar_lea.vmem %s140_s17, 32 }
  0x2b   :  { %v50_v10 = vadd.f32 %v49_v3, %v46_v1  ;;  %v55_v13 = vrot.slane %v53_v6, 1  ;;  %v74_v15 = vmul.f32 %v73_v9, %v43_v0  ;;  %v87_v16 = vstv %s154_s9  ;;  %p201_p13 = scmp.ne.s32.totalorder %s140_s17, %s200_s18  ;;  %p205_p0 = scmp.lt.s32.totalorder %s140_s17, %s140_s17 }
  0x2c   :  { %v62_v14 = vrot.slane %v60_v7, 2  ;;  %v69_v18 = vrot.slane %v67_v11, 3  ;;  %v81_v19 = vmul.f32 %v80_v12, %v43_v0  ;;  %v94_v20 = vstv %s268_s10  ;;  %p206_p1 = scmp.lt.s32.totalorder %s204_s19, %s200_s18 }
  0x2d   :  { %v57_v17 = vadd.f32 %v55_v13, %v50_v10  ;;  %v76_v22 = vrot.slane %v74_v15, 4  ;;  %v88_v23 = vmul.f32 %v87_v16, %v43_v0  ;;  %v95_v26 = vmul.f32 %v94_v20, %v43_v0 }
  0x2e   :  { %v83_v25 = vrot.slane %v81_v19, 5  ;;  %v105_v28 = vstv %s157_s2  ;;  %v101_v31 = vstv %s156_s13  ;;  %v112_v32 = vstv %s158_s14  ;;  %p207_p2 = por %p206_p1, %p205_p0 }
  0x2f   :  { %v64_v21 = vadd.f32 %v62_v14, %v57_v17  ;;  %v90_v30 = vrot.slane %v88_v23, 6  ;;  %v97_v34 = vrot.slane %v95_v26, 7  ;;  %v106_v35 = vmul.f32 %v105_v28, %v44_v27 }
  0x30   :  { %v119_v36 = vstv %s159_s1  ;;  %v102_v38 = vmul.f32 %v101_v31, %v44_v27  ;;  %v113_v39 = vmul.f32 %v112_v32, %v44_v27  ;;  %v126_v40 = vstv %s160_s15  ;;  %p208_p3 = pnand %p207_p2, %p201_p13 }
  0x31   :  { %v71_v24 = vadd.f32 %v69_v18, %v64_v21  ;;  %v108_v42 = vrot.slane %v106_v35, 1  ;;  %v120_v43 = vmul.f32 %v119_v36, %v44_v27  ;;  %v127_v46 = vmul.f32 %v126_v40, %v44_v27 }
  0x32   :  { %v115_v45 = vrot.slane %v113_v39, 2 }
  0x33   :  { %v78_v29 = vadd.f32 %v76_v22, %v71_v24  ;;  %v122_v48 = vrot.slane %v120_v43, 3  ;;  %v129_v50 = vrot.slane %v127_v46, 4 }
  0x35   :  { %v85_v33 = vadd.f32 %v83_v25, %v78_v29 }
  0x37   :  { %v92_v37 = vadd.f32 %v90_v30, %v85_v33 }
  0x39   :  { %v99_v41 = vadd.f32 %v97_v34, %v92_v37 }
  0x3b   :  { %v103_v44 = vadd.f32 %v102_v38, %v99_v41 }
  0x3d   :  { %v110_v47 = vadd.f32 %v108_v42, %v103_v44 }
  0x3f   :  { %v117_v49 = vadd.f32 %v115_v45, %v110_v47 }
  0x41   :  { %v124_v51 = vadd.f32 %v122_v48, %v117_v49 }
  0x43   :  { %v131_v52 = vadd.f32 %v129_v50, %v124_v51 }
  0x45   :  { %132 = vst [vmem:[#allocation8] sm:$0x1] %v131_v52 }
  0x46   :  { %211 = shalt.err (!%p208_p3)
}
  0x47   :  { %s212_s22 = scalar_lea.hbm %s289_s3, 16 }
  0x48   :  { %p213_p4 = scmp.ne.s32.totalorder %s289_s3, %s212_s22  ;;  %p216_p5 = scmp.lt.u32.totalorder %s212_s22, %s289_s3 }
  0x4a   :  { %p218_p6 = pnand %p216_p5, %p213_p4 }
  0x4c   :  { %221 = shalt.err (!%p218_p6)
}
  0x4d   :  { %142 = dma.vmem_to_hbm [thread:$0]  %s140_s17, 16, %s289_s3, [#allocation5]  }
  0x4e   :  { %226 = dma.done.wait [#allocation5], 16  }
  0x4f   :  { %227 = vsyncadd [#allocation5], 4294967280 }
  0x50   :  { %146 = vsyncpa [#allocation4], 1 }
  0x51   :  { %147 = vsyncpa [#allocation5], 1 }
  0x52   :  { %148 = vsyncpa [#allocation6], 1 }

</bundles_post_ra>
